<compile_context>
chip_gen: v7x
topology: tpu7x:2x2x1
jax: 0.10.0
libtpu: 0.0.40
codegen_flags: <defaults>
</compile_context>

<pallas_src>
import functools

import numpy as np
import jax
import jax.numpy as jnp
from jax.experimental import pallas as pl
from jax.experimental.pallas import tpu as pltpu


def _pair(v):
    if isinstance(v, (tuple, list)):
        a, b = v
        return int(a), int(b)
    return int(v), int(v)


def _maxpool_kernel(x_ref, s_ref, o_ref, *, taps, span, compute_dtype):
    # x_ref: (m_t, L_in) rows of flattened pooling cells.
    # s_ref: (span, L_out) one-hot selection matrix (decimation on the MXU).
    # o_ref: (m_t, L_out)
    acc = x_ref[:, taps[0]:taps[0] + span]          # ref-level static slice
    for d in taps[1:]:
        acc = jnp.maximum(acc, x_ref[:, d:d + span])
    acc = acc.astype(compute_dtype)
    out = jnp.dot(acc, s_ref[...], preferred_element_type=jnp.float32)
    o_ref[...] = out.astype(o_ref.dtype)


def pallas_maxpool2d(x: jax.Array, kernel_size, stride=None, padding=0) -> jax.Array:
    """Equivalent to torch.nn.MaxPool2d(kernel_size, stride, padding)(x) on NCHW."""
    kh, kw = _pair(kernel_size)
    sh, sw = _pair(stride) if stride is not None else (kh, kw)
    ph, pw = _pair(padding)

    n, c, h, w = x.shape
    dtype = x.dtype
    itemsize = jnp.dtype(dtype).itemsize

    if jnp.issubdtype(dtype, jnp.floating):
        pad_val = float(jnp.finfo(dtype).min)
    elif jnp.issubdtype(dtype, jnp.integer) and jnp.iinfo(dtype).bits <= 16:
        pad_val = int(jnp.iinfo(dtype).min)
    else:
        # TODO(synk): int32/int64 max-pool needs an exact non-MXU selection path.
        raise NotImplementedError(f"pallas_maxpool2d: unsupported dtype {dtype}")

    h_out = (h + 2 * ph - kh) // sh + 1
    w_out = (w + 2 * pw - kw) // sw + 1
    assert h_out > 0 and w_out > 0, "pooling window larger than (padded) input"

    overlap_h = kh > sh
    overlap_w = kw > sw
    tgt_w = (w_out - 1) * sw + kw if overlap_w else w_out * sw
    if overlap_h:
        # Overlapping row windows: pack a whole image per flattened row.
        g, r_rows = h_out, 1
        tgt_h = (h_out - 1) * sh + kh
    else:
        # Pack g consecutive row-cells per flattened row so that the output
        # block is lane-dense (g * W_out >= 128) whenever H_out allows it.
        g = next((d for d in range(1, h_out + 1)
                  if h_out % d == 0 and d * w_out >= 128), h_out)
        r_rows = h_out // g
        tgt_h = h_out * sh

    # ---- pad / crop once so the (virtually padded) image is (tgt_h, tgt_w) ---
    # TODO(synk): fold this copy (only taken for padding>0 or ragged H/W) into
    # the kernel via clamped tap indices.
    pad_top, pad_left = ph, pw
    pad_bot = tgt_h - h - ph
    pad_right = tgt_w - w - pw
    if pad_top or pad_left or pad_bot or pad_right:
        if pad_bot < 0:
            x = x[:, :, :tgt_h - ph, :]
            pad_bot = 0
        if pad_right < 0:
            x = x[:, :, :, :tgt_w - pw]
            pad_right = 0
        if pad_top or pad_left or pad_bot or pad_right:
            x = jnp.pad(
                x, ((0, 0), (0, 0), (pad_top, pad_bot), (pad_left, pad_right)),
                constant_values=pad_val)

    nc = n * c
    row_h = tgt_h // r_rows                 # input rows packed per flattened row
    l_in = row_h * tgt_w
    l_out = g * w_out
    m = nc * r_rows
    span = (g - 1) * sh * tgt_w + (w_out - 1) * sw + 1
    taps = tuple(ih * tgt_w + iw for ih in range(kh) for iw in range(kw))
    assert span + max(taps) <= l_in

    if span * l_out * 4 > 16 * 1024 * 1024:
        # TODO(synk): kernel>stride combined with very large spatial dims would
        # need a block-structured selection matrix; not implemented.
        raise NotImplementedError(
            "pallas_maxpool2d: overlapping windows with very large spatial size")

    compute_dtype = jnp.bfloat16 if dtype == jnp.bfloat16 else jnp.float32

    # One-hot selection matrix: lane (c*sh*tgt_w + wo*sw) -> output lane (c*w_out + wo).
    s_np = np.zeros((span, l_out), dtype=np.float32)
    cc = np.repeat(np.arange(g), w_out)
    ww = np.tile(np.arange(w_out), g)
    s_np[cc * sh * tgt_w + ww * sw, cc * w_out + ww] = 1.0
    s_mat = jnp.asarray(s_np, dtype=compute_dtype)

    # Contiguous (bitcast) view: each row = g row-cells of one image.
    x2d = x.reshape(m, l_in)

    # ---- generation-aware block sizing ---------------------------------------
    try:
        vmem_cap = int(pltpu.get_tpu_info().vmem_capacity_bytes)
    except Exception:
        vmem_cap = 64 * 1024 * 1024
    target_block_bytes = max(512 * 1024, min(8 * 1024 * 1024, vmem_cap // 24))
    row_bytes = l_in * itemsize
    max_rows = max(1, target_block_bytes // row_bytes)
    if m <= max_rows:
        m_t = m
    else:
        divs8 = [d for d in range(8, int(min(m, max_rows)) + 1, 8) if m % d == 0]
        m_t = max(divs8) if divs8 else max(8, (int(max_rows) // 8) * 8)
    m_pad = -(-m // m_t) * m_t
    if m_pad != m:
        x2d = jnp.pad(x2d, ((0, m_pad - m), (0, 0)), constant_values=pad_val)
    n_blocks = m_pad // m_t

    kernel = functools.partial(_maxpool_kernel, taps=taps, span=span,
                               compute_dtype=compute_dtype)
    cost = pl.CostEstimate(
        flops=2 * m_pad * span * l_out + m_pad * l_in * max(0, len(taps) - 1),
        transcendentals=0,
        bytes_accessed=m_pad * (l_in + l_out) * itemsize
        + int(s_mat.size) * s_mat.dtype.itemsize,
    )

    out2d = pl.pallas_call(
        kernel,
        out_shape=jax.ShapeDtypeStruct((m_pad, l_out), dtype),
        grid_spec=pltpu.PrefetchScalarGridSpec(
            num_scalar_prefetch=0,
            grid=(n_blocks,),
            in_specs=[pl.BlockSpec((m_t, l_in), lambda i: (i, 0)),
                      pl.BlockSpec((span, l_out), lambda i: (0, 0))],
            out_specs=pl.BlockSpec((m_t, l_out), lambda i: (i, 0)),
        ),
        compiler_params=pltpu.CompilerParams(
            dimension_semantics=("parallel",),
            vmem_limit_bytes=int(min(vmem_cap // 2, 128 * 1024 * 1024)),
        ),
        cost_estimate=cost,
    )(x2d, s_mat)

    if m_pad != m:
        out2d = out2d[:m]
    # (N*C*R, g*W_out) -> NCHW, purely contiguous reshape.
    return out2d.reshape(n, c, h_out, w_out)


def _ref_maxpool2d(x, kernel_size, stride=None, padding=0):
    kh, kw = _pair(kernel_size)
    sh, sw = _pair(stride) if stride is not None else (kh, kw)
    ph, pw = _pair(padding)
    return jax.lax.reduce_window(
        x, -jnp.inf, jax.lax.max,
        window_dimensions=(1, 1, kh, kw),
        window_strides=(1, 1, sh, sw),
        padding=((0, 0), (0, 0), (ph, ph), (pw, pw)),
    )


if __name__ == "__main__":
    key = jax.random.PRNGKey(0)
    # Small NCHW input consistent with CIFAR-10 style activations.
    x = jax.random.normal(key, (2, 4, 16, 16), dtype=jnp.float32)

    # Default MaxPool2D(kernel_size=2) -> stride=2, padding=0.
    y = pallas_maxpool2d(x, kernel_size=2)
    jax.block_until_ready(y)
    y_ref = _ref_maxpool2d(x, kernel_size=2)
    assert y.shape == (2, 4, 8, 8) and y.dtype == x.dtype
    assert jnp.allclose(y, y_ref)

    # Non-default config: overlapping windows + padding.
    y2 = pallas_maxpool2d(x, kernel_size=3, stride=2, padding=1)
    jax.block_until_ready(y2)
    y2_ref = _ref_maxpool2d(x, kernel_size=3, stride=2, padding=1)
    assert y2.shape == y2_ref.shape
    assert jnp.allclose(y2, y2_ref)

    print("KERNEL_OK")
</pallas_src>

<mosaic_0001>
module attributes {stable_mosaic.version = 11 : i64} {
  func.func @_maxpool_kernel(%arg0: i32, %arg1: memref<8x256xf32, #tpu.memory_space<vmem>>, %arg2: memref<239x64xf32, #tpu.memory_space<vmem>>, %arg3: memref<8x64xf32, #tpu.memory_space<vmem>>) attributes {dimension_semantics = [#tpu.dimension_semantics<parallel>], iteration_bounds = array<i64: 1>, scalar_prefetch = 0 : i64, scratch_operands = 0 : i64, tpu.core_type = #tpu.core_type<tc>, window_params = [{transform_indices = @transform_0, window_bounds = array<i64: 8, 256>}, {pipeline_mode = #tpu.pipeline_mode<synchronous>, transform_indices = @transform_1, window_bounds = array<i64: 239, 64>}, {transform_indices = @transform_2, window_bounds = array<i64: 8, 64>}]} {
    %c0 = arith.constant 0 : index
    %c0_0 = arith.constant 0 : index
    %0 = vector.load %arg1[%c0, %c0_0] : memref<8x256xf32, #tpu.memory_space<vmem>>, vector<8x239xf32>
    %c0_1 = arith.constant 0 : index
    %c1 = arith.constant 1 : index
    %1 = vector.load %arg1[%c0_1, %c1] : memref<8x256xf32, #tpu.memory_space<vmem>>, vector<8x239xf32>
    %2 = arith.maximumf %0, %1 : vector<8x239xf32>
    %c0_2 = arith.constant 0 : index
    %c16 = arith.constant 16 : index
    %3 = vector.load %arg1[%c0_2, %c16] : memref<8x256xf32, #tpu.memory_space<vmem>>, vector<8x239xf32>
    %4 = arith.maximumf %2, %3 : vector<8x239xf32>
    %c0_3 = arith.constant 0 : index
    %c17 = arith.constant 17 : index
    %5 = vector.load %arg1[%c0_3, %c17] : memref<8x256xf32, #tpu.memory_space<vmem>>, vector<8x239xf32>
    %6 = arith.maximumf %4, %5 : vector<8x239xf32>
    %c0_4 = arith.constant 0 : index
    %c0_5 = arith.constant 0 : index
    %7 = vector.load %arg2[%c0_4, %c0_5] : memref<239x64xf32, #tpu.memory_space<vmem>>, vector<239x64xf32>
    %cst = arith.constant dense<0.000000e+00> : vector<8x64xf32>
    %8 = tpu.matmul %6, %7, %cst {dimension_numbers = #tpu.dot_dimension_numbers<[1], [0], [0], [1], [0, 0, 1, 1], [], []>} : vector<8x239xf32>, vector<239x64xf32>, vector<8x64xf32> -> vector<8x64xf32>
    %c0_6 = arith.constant 0 : index
    %c0_7 = arith.constant 0 : index
    %9 = vector.load %arg3[%c0_6, %c0_7] : memref<8x64xf32, #tpu.memory_space<vmem>>, vector<8x64xf32>
    tpu.vector_store %arg3[%c0_6, %c0_7], %8 {strides = array<i32>} : memref<8x64xf32, #tpu.memory_space<vmem>>, vector<8x64xf32>,
    return
  }
  func.func @transform_0(%arg0: i32) -> (i32, i32) {
    %c0_i32 = arith.constant 0 : i32
    %c0_i32_0 = arith.constant 0 : i32
    return %arg0, %c0_i32 : i32, i32
  }
  func.func @transform_1(%arg0: i32) -> (i32, i32) {
    %c0_i32 = arith.constant 0 : i32
    %c0_i32_0 = arith.constant 0 : i32
    %c0_i32_1 = arith.constant 0 : i32
    return %c0_i32, %c0_i32_0 : i32, i32
  }
  func.func @transform_2(%arg0: i32) -> (i32, i32) {
    %c0_i32 = arith.constant 0 : i32
    %c0_i32_0 = arith.constant 0 : i32
    return %arg0, %c0_i32 : i32, i32
  }
}

</mosaic_0001>

<bundles_post_ra>
// kernel: tpu_custom_call.1
= control target key start
LH: loop header
LB: loop body
LE: loop exit
PB: predicated region body
PF: predicated region fallthrough
CT: control target
= control target key end

     0   :  { %s247_s13 = smov 112   ;;  %s248_s14 = smov 127   ;;  %v249_v5 = vmov 0.0|0.0   ;;  %s403_s0 = inlined_call_operand.vmem [shape: f32[8,256], index: 0, kind: input, shape index: {}]   ;;  %s404_s1 = inlined_call_operand.vmem [shape: f32[239,64], index: 1, kind: input, shape index: {}]   ;;  %s405_s2 = inlined_call_operand.hbm [shape: f32[8,64], index: 2, kind: output, shape index: {}]  }
   0x1   :  { %v271_v0 = vld [vmem:[%s403_s0] sm:$0xff]  ;;  %v47_v2 = vld [vmem:[%s404_s1 + $0x8] sm:$0xff]  ;;  %v48_v3 = vld [vmem:[%s404_s1 + $0x10] sm:$0xff]  ;;  %171 = vmatprep.subr.bf16.mxu0 %v249_v5  ;;  %s250_s26 = smov 111  }
   0x2   :  { %v46_v1 = vld [vmem:[%s404_s1] sm:$0xff]  ;;  %26 = vrot.lane.b32.xlu1 %v271_v0, %s247_s13  ;;  %16 = vrot.lane.b32.xlu0 %v271_v0, %s248_s14  ;;  %v287_v4 = vld [vmem:[%s403_s0 + $0x8] sm:$0xff] }
   0x3   :  { %v172_v6 = vpack.c.bf16 %v47_v2, %v46_v1  ;;  %v49_v7 = vld [vmem:[%s404_s1 + $0x18] sm:$0xff]  ;;  %v50_v9 = vld [vmem:[%s404_s1 + $0x20] sm:$0xff]  ;;  %v51_v10 = vld [vmem:[%s404_s1 + $0x28] sm:$0xff] }
   0x4   :  { %v175_v8 = vpack.c.bf16 %v49_v7, %v48_v3  ;;  %v178_v11 = vpack.c.bf16 %v51_v10, %v50_v9  ;;  %v52_v12 = vld [vmem:[%s404_s1 + $0x30] sm:$0xff]  ;;  %v53_v13 = vld [vmem:[%s404_s1 + $0x38] sm:$0xff] }
   0x5   :  { %173 = vmatpush1.bf16.msra.mxu0 %v172_v6 }
   0x6   :  { %28 = vrot.lane.b32.xlu1 %v287_v4, %s247_s13  ;;  %18 = vrot.lane.b32.xlu0 %v287_v4, %s248_s14 }
   0x7   :  { %174 = vmatprep.subr.bf16.mxu0 %v249_v5 }
   0x9   :  { %176 = vmatpush1.bf16.msra.mxu0 %v175_v8 }
   0xa   :  { %38 = vrot.lane.b32.xlu1 %v287_v4, %s250_s26  ;;  %36 = vrot.lane.b32.xlu0 %v271_v0, %s250_s26 }
   0xb   :  { %177 = vmatprep.subr.bf16.mxu0 %v249_v5 }
   0xc   :  { %7 = vsyncpa [#allocation3], 0  ;;  %v181_v14 = vpack.c.bf16 %v53_v13, %v52_v12  ;;  %v54_v15 = vld [vmem:[%s404_s1 + $0x40] sm:$0xff]  ;;  %v55_v16 = vld [vmem:[%s404_s1 + $0x48] sm:$0xff]  ;;  %vm79_vm0 = vcmask 1046528   ;;  %vm251_vm1 = vmmov 1  }
   0xd   :  { %179 = vmatpush1.bf16.msra.mxu0 %v178_v11  ;;  %v184_v17 = vpack.c.bf16 %v55_v16, %v54_v15  ;;  %v56_v18 = vld [vmem:[%s404_s1 + $0x50] sm:$0xff]  ;;  %v57_v19 = vld [vmem:[%s404_s1 + $0x58] sm:$0xff]  ;;  %v58_v21 = vld [vmem:[%s404_s1 + $0x60] sm:$0xff]  ;;  %vm20_vm3 = vcmask 1039360   ;;  %vm30_vm4 = vcmask 916480   ;;  %vm40_vm5 = vcmask 908288  }
   0xe   :  { %180 = vmatprep.subr.bf16.mxu0 %v249_v5  ;;  %v187_v20 = vpack.c.bf16 %v57_v19, %v56_v18  ;;  %v59_v22 = vld [vmem:[%s404_s1 + $0x68] sm:$0xff]  ;;  %v60_v24 = vld [vmem:[%s404_s1 + $0x70] sm:$0xff]  ;;  %v61_v25 = vld [vmem:[%s404_s1 + $0x78] sm:$0xff]  ;;  %vm153_vm6 = vcmask 523264  }
   0xf   :  { %v190_v23 = vpack.c.bf16 %v59_v22, %v58_v21  ;;  %v193_v26 = vpack.c.bf16 %v61_v25, %v60_v24  ;;  %v62_v27 = vld [vmem:[%s404_s1 + $0x80] sm:$0xff]  ;;  %v63_v28 = vld [vmem:[%s404_s1 + $0x88] sm:$0xff]  ;;  %v64_v30 = vld [vmem:[%s404_s1 + $0x90] sm:$0xff] }
  0x10   :  { %v196_v29 = vpack.c.bf16 %v63_v28, %v62_v27  ;;  %v65_v31 = vld [vmem:[%s404_s1 + $0x98] sm:$0xff]  ;;  %v66_v33 = vld [vmem:[%s404_s1 + $0xa0] sm:$0xff]  ;;  %v67_v34 = vld [vmem:[%s404_s1 + $0xa8] sm:$0xff] }
  0x11   :  { %182 = vmatpush1.bf16.msra.mxu0 %v181_v14  ;;  %v199_v32 = vpack.c.bf16 %v65_v31, %v64_v30  ;;  %v202_v35 = vpack.c.bf16 %v67_v34, %v66_v33  ;;  %v68_v36 = vld [vmem:[%s404_s1 + $0xb0] sm:$0xff]  ;;  %v69_v37 = vld [vmem:[%s404_s1 + $0xb8] sm:$0xff]  ;;  %v70_v39 = vld [vmem:[%s404_s1 + $0xc0] sm:$0xff] }
  0x12   :  { %183 = vmatprep.subr.bf16.mxu0 %v249_v5  ;;  %v205_v38 = vpack.c.bf16 %v69_v37, %v68_v36  ;;  %v71_v40 = vld [vmem:[%s404_s1 + $0xc8] sm:$0xff]  ;;  %v72_v42 = vld [vmem:[%s404_s1 + $0xd0] sm:$0xff]  ;;  %v73_v43 = vld [vmem:[%s404_s1 + $0xd8] sm:$0xff] }
  0x13   :  { %v208_v41 = vpack.c.bf16 %v71_v40, %v70_v39  ;;  %v211_v44 = vpack.c.bf16 %v73_v43, %v72_v42  ;;  %v74_v45 = vld [vmem:[%s404_s1 + $0xe0] sm:$0xff]  ;;  %v75_v46 = vld [vmem:[%s404_s1 + $0xe8] sm:$0x7f]  ;;  %vm215_vm2 = vmpackc.low %vm79_vm0, %vm251_vm1  ;;  %s252_s1 = smov [#allocation2]  }
  0x14   :  { %v214_v47 = vpack.c.bf16 %v75_v46, %v74_v45  ;;  %s161_s18 = sshll.u32 %s252_s1, 4  ;;  %s162_s18 = int_to_ptr.vmem [resolvable:$true] %s161_s18 }
  0x15   :  { %185 = vmatpush1.bf16.msra.mxu0 %v184_v17  ;;  %s223_s19 = scalar_lea.vmem %s162_s18, 128  ;;  %p228_p1 = scmp.lt.s32.totalorder %s162_s18, %s162_s18 }
  0x16   :  { %186 = vmatprep.subr.bf16.mxu0 %v249_v5  ;;  %p224_p0 = scmp.ne.s32.totalorder %s162_s18, %s223_s19  ;;  %p229_p2 = scmp.lt.s32.totalorder %s223_s19, %s223_s19 }
  0x18   :  { %p230_p3 = por %p229_p2, %p228_p1 }
  0x19   :  { %188 = vmatpush1.bf16.msra.mxu0 %v187_v20 }
  0x1a   :  { %189 = vmatprep.subr.bf16.mxu0 %v249_v5  ;;  %p231_p4 = pnand %p230_p3, %p224_p0 }
  0x1d   :  { %191 = vmatpush1.bf16.msra.mxu0 %v190_v23 }
  0x1e   :  { %192 = vmatprep.subr.bf16.mxu0 %v249_v5 }
  0x21   :  { %194 = vmatpush1.bf16.msra.mxu0 %v193_v26 }
  0x22   :  { %195 = vmatprep.subr.bf16.mxu0 %v249_v5 }
  0x25   :  { %197 = vmatpush1.bf16.msra.mxu0 %v196_v29 }
  0x26   :  { %198 = vmatprep.subr.bf16.mxu0 %v249_v5 }
  0x29   :  { %200 = vmatpush1.bf16.msra.mxu0 %v199_v32 }
  0x2a   :  { %201 = vmatprep.subr.bf16.mxu0 %v249_v5 }
  0x2d   :  { %203 = vmatpush1.bf16.msra.mxu0 %v202_v35 }
  0x2e   :  { %204 = vmatprep.subr.bf16.mxu0 %v249_v5 }
  0x31   :  { %206 = vmatpush1.bf16.msra.mxu0 %v205_v38 }
  0x32   :  { %207 = vmatprep.subr.bf16.mxu0 %v249_v5 }
  0x35   :  { %209 = vmatpush1.bf16.msra.mxu0 %v208_v41 }
  0x36   :  { %210 = vmatprep.subr.bf16.mxu0 %v249_v5 }
  0x39   :  { %212 = vmatpush1.bf16.msra.mxu0 %v211_v44 }
  0x3a   :  { %213 = vmatprep.subr.bf16.mxu0 %v249_v5 }
  0x3d   :  { %216 = vmatpush1.bf16.msk.msra.mxu0 %vm215_vm2, %v214_v47 }
  0x74   :  { %v27_v48 = vpop.permute.xlu1 %26  ;;  %v17_v49 = vpop.permute.xlu0 %16 }
  0x78   :  { %v29_v50 = vpop.permute.xlu1 %28  ;;  %v19_v51 = vpop.permute.xlu0 %18 }
  0x79   :  { %v21_v52 = vsel %vm20_vm3, %v17_v49, %v19_v51  ;;  %v25_v53 = vmax.f32 %v287_v4, %v19_v51  ;;  %v31_v55 = vsel %vm30_vm4, %v27_v48, %v29_v50 }
  0x7a   :  { %v24_v54 = vmax.f32 %v271_v0, %v21_v52 }
  0x7b   :  { %v35_v56 = vmax.f32 %v25_v53, %v29_v50 }
  0x7c   :  { %v34_v57 = vmax.f32 %v24_v54, %v31_v55  ;;  %v39_v58 = vpop.permute.xlu1 %38  ;;  %v37_v59 = vpop.permute.xlu0 %36 }
  0x7d   :  { %v45_v60 = vmax.f32 %v35_v56, %v39_v58  ;;  %v41_v61 = vsel %vm40_vm5, %v37_v59, %v39_v58 }
  0x7e   :  { %v44_v62 = vmax.f32 %v34_v57, %v41_v61 }
  0x7f   :  { %170 = vmatprep.mubr.msk.f32.mxu0 %vm40_vm5, %v45_v60 }
  0x80   :  { %148 = vmatmul.mubr.f32.vlgmr.msra.gmra.mrb[0].mxu0 %v44_v62 }
 0x153   :  { %v149_v63 = vpop.f32.mrb[0].mxu0 }
 0x154   :  { %154 = vst.msk [vmem:[#allocation2] sm:$0xff] %vm153_vm6, %v149_v63  ;;  %v151_v1 = vpop.f32.mrb[1].mxu0 }
 0x155   :  { %234 = shalt.err (!%p231_p4)
}
 0x156   :  { %s235_s22 = scalar_lea.hbm %s405_s2, 128 }
 0x157   :  { %p236_p5 = scmp.ne.s32.totalorder %s405_s2, %s235_s22  ;;  %p239_p6 = scmp.lt.u32.totalorder %s235_s22, %s405_s2 }
 0x159   :  { %p241_p7 = pnand %p239_p6, %p236_p5 }
 0x15b   :  { %244 = shalt.err (!%p241_p7)
}
 0x15c   :  { %164 = dma.vmem_to_hbm [thread:$0]  %s162_s18, 128, %s405_s2, [#allocation3]  }
 0x15d   :  { %245 = dma.done.wait [#allocation3], 128  }
 0x15e   :  { %246 = vsyncadd [#allocation3], 4294967168 }
 0x15f   :  { %168 = vsyncpa [#allocation3], 1 }

</bundles_post_ra>
